<compile_context>
chip_gen: v7x
topology: tpu7x:2x2x1
jax: 0.10.0
libtpu: 0.0.40
codegen_flags: <defaults>
</compile_context>

<pallas_src>
import functools
import numpy as np
import jax
import jax.numpy as jnp
from jax.experimental import pallas as pl
from jax.experimental.pallas import tpu as pltpu


def _round_up(x, m):
    return ((x + m - 1) // m) * m


# ------------------------------------------------------------------ kernel ---
@functools.lru_cache(maxsize=None)
def _make_classifier_kernel(n_inputs):
    """Kernel factory: n_inputs modality refs + (W, b) inputs + out + scratch."""

    def kernel(*args):
        x_refs = args[:n_inputs]
        w_ref, b_ref, out_ref, acc_ref = args[n_inputs:]
        k = pl.program_id(1)

        @pl.when(k == 0)
        def _():
            acc_ref[...] = jnp.zeros_like(acc_ref)

        # Partial spatial sums for every modality, written into the packed
        # channel layout of the accumulator with static slices (no concat,
        # no HBM-materialized concatenation in the wrapper).
        off = 0
        for x in x_refs:
            c = x.shape[1]
            acc_ref[:, off:off + c] += jnp.sum(
                x[...].astype(jnp.float32), axis=-1)
            off += c

        @pl.when(k == pl.num_programs(1) - 1)
        def _():
            # 1/HW is folded into w_ref at pack time, so acc holds plain sums.
            y = jnp.dot(acc_ref[...], w_ref[...],
                        preferred_element_type=jnp.float32) + b_ref[...]
            out_ref[...] = y.astype(out_ref.dtype)

    return kernel


# ---------------------------------------------------------- weight packing ---
def pack_classifier_params(cls_all_params, cls_params, H, W):
    """Pack all 1x1-conv heads into one block-diagonal (Ctot, Kpad) matrix.

    Done once with numpy (no per-call dynamic_update_slice chain).  The 1/HW
    mean scale is folded into the weight columns.  Head / channel order is
    [all, data_0, data_1, ...] -> result order [hc, out_0, out_1, ...].
    """
    heads = [cls_all_params] + list(cls_params)
    num_class = int(np.asarray(heads[0][1]).shape[0])
    n_heads = len(heads)
    Kout = n_heads * num_class
    Kpad = max(128, _round_up(Kout, 128))
    c_list = [int(np.asarray(w).shape[1]) for w, _ in heads]
    Ctot = sum(c_list)
    inv_hw = 1.0 / float(H * W)

    Wc = np.zeros((Ctot, Kpad), np.float32)
    bc = np.zeros((1, Kpad), np.float32)
    row = 0
    for i, (w, b) in enumerate(heads):
        w = np.asarray(w, np.float32)
        b = np.asarray(b, np.float32)
        c_in = w.shape[1]
        Wc[row:row + c_in, i * num_class:(i + 1) * num_class] = \
            w[:, :, 0, 0].T * inv_hw
        bc[0, i * num_class:(i + 1) * num_class] = b
        row += c_in

    return dict(W=jnp.asarray(Wc), b=jnp.asarray(bc),
                num_class=num_class, n_heads=n_heads, Kout=Kout, Kpad=Kpad,
                Ctot=Ctot, c_list=tuple(c_list), HW=H * W)


# ----------------------------------------------------------------- wrapper ---
# Double-buffered activation-block budget per grid step (~24 MiB keeps the
# footprint comfortably inside v7x's 64 MiB physical VMEM with headroom for
# the weight block / output / scratch, and inside the limits we set for
# v5e/v6e).
_X_BLOCK_BUDGET = 24 * 1024 * 1024


def _choose_spatial_tile(hw, ctot, itemsize, budget):
    # Whole spatial extent if an 8-row double-buffered block fits; otherwise a
    # 128-multiple divisor of HW so the reduction grid axis keeps per-step
    # VMEM bounded and the HBM DMA pipelined.
    if 2 * 8 * ctot * hw * itemsize <= budget:
        return hw
    best = None
    t = 128
    while t <= hw:
        if hw % t == 0 and 2 * 8 * ctot * t * itemsize <= budget:
            best = t
        t += 128
    # TODO(synk): if HW has no 128-multiple divisor we fall back to one giant
    # spatial block (only matters for very large, oddly shaped feature maps).
    return best if best is not None else hw


def classifier_forward(a, data, packed):
    """Pallas implementation of Classifier.forward((a, data))."""
    xs = [a] + list(data)
    N = a.shape[0]
    H, W = a.shape[2], a.shape[3]
    HW = H * W
    assert HW == packed["HW"], "packed params were built for a different H*W"
    c_list = [int(x.shape[1]) for x in xs]
    assert tuple(c_list) == tuple(packed["c_list"])

    Ctot, Kpad = packed["Ctot"], packed["Kpad"]
    num_class, n_heads, Kout = packed["num_class"], packed["n_heads"], packed["Kout"]

    itemsize = jnp.dtype(a.dtype).itemsize

    # Spatial reduction tile (second grid axis, "arbitrary").
    THW = _choose_spatial_tile(HW, Ctot, itemsize, _X_BLOCK_BUDGET)
    nk = HW // THW

    # Batch tile from the VMEM budget (not a fixed 8).
    if N <= 8:
        NB = N                              # single small block == full batch dim
    else:
        row_bytes = 2 * Ctot * THW * itemsize       # double-buffered, per batch row
        NB = max(8, min((_X_BLOCK_BUDGET // row_bytes) // 8 * 8, _round_up(N, 8)))
        n8 = _round_up(N, 8)
        if n8 >= 16:                        # >= 2 batch steps so v7x uses both TCs
            NB = min(NB, _round_up(pl.cdiv(n8, 2), 8))
        NB = max(NB, 8)
    N_pad = _round_up(N, NB)

    # NCHW -> (N, C, HW) is a free reshape; pad batch only if needed.
    xs3 = [x.reshape(x.shape[0], x.shape[1], HW) for x in xs]
    if N_pad != N:
        xs3 = [jnp.pad(x, ((0, N_pad - N), (0, 0), (0, 0))) for x in xs3]

    grid = (N_pad // NB, nk)

    in_specs = [
        pl.BlockSpec((NB, c, THW), lambda n, k: (n, 0, k)) for c in c_list
    ] + [
        pl.BlockSpec((Ctot, Kpad), lambda n, k: (0, 0)),
        pl.BlockSpec((1, Kpad), lambda n, k: (0, 0)),
    ]

    # VMEM limit from the actual footprint (with headroom), capped below v7x
    # physical; also lifts v5e's 16 MiB default scoped limit when NB is large.
    est = (2 * sum(NB * c * THW * itemsize for c in c_list)
           + 2 * Ctot * Kpad * 4 + 2 * Kpad * 4
           + 2 * NB * Kpad * 4 + NB * max(Ctot, 128) * 4)
    vmem_limit = int(min(max(2 * est + (4 << 20), 32 << 20), 48 << 20))

    out = pl.pallas_call(
        _make_classifier_kernel(len(xs3)),
        out_shape=jax.ShapeDtypeStruct((N_pad, Kpad), jnp.float32),
        grid_spec=pltpu.PrefetchScalarGridSpec(
            num_scalar_prefetch=0,
            grid=grid,
            in_specs=in_specs,
            out_specs=pl.BlockSpec((NB, Kpad), lambda n, k: (n, 0)),
            scratch_shapes=[pltpu.VMEM((NB, Ctot), jnp.float32)],
        ),
        compiler_params=pltpu.CompilerParams(
            dimension_semantics=("parallel", "arbitrary"),
            vmem_limit_bytes=vmem_limit),
    )(*xs3, packed["W"], packed["b"])

    out = out[:N, :Kout]
    return [out[:, i * num_class:(i + 1) * num_class] for i in range(n_heads)]


# --------------------------------------------------------------- reference ---
def _conv1x1_nchw(x, w, b):
    y = jax.lax.conv_general_dilated(
        x, w, window_strides=(1, 1), padding="VALID",
        dimension_numbers=("NCHW", "OIHW", "NCHW"))
    return y + b[None, :, None, None]


def classifier_reference(a, data, cls_all_params, cls_params):
    out = []
    for d, (w, b) in zip(data, cls_params):
        f = _conv1x1_nchw(d, w, b)
        out.append(f.reshape(f.shape[0], f.shape[1], -1).mean(axis=2))
    w_all, b_all = cls_all_params
    hc = _conv1x1_nchw(a, w_all, b_all)
    hc = hc.reshape(hc.shape[0], hc.shape[1], -1).mean(axis=2)
    return [hc] + out


# -------------------------------------------------------------------- main ---
if __name__ == "__main__":
    key = jax.random.PRNGKey(0)
    N, H, W = 2, 16, 16
    feature_num, num_class = 4, 2
    datatype = "ebf"
    modal_map = {"e": 2 * feature_num, "b": feature_num, "f": feature_num}
    C_list = [modal_map[d] for d in datatype]       # [8, 4, 4]
    C_all = sum(C_list)                             # 16

    ks = jax.random.split(key, 16)
    ki = iter(range(16))

    a = jax.random.normal(ks[next(ki)], (N, C_all, H, W), jnp.float32)
    data = [jax.random.normal(ks[next(ki)], (N, c, H, W), jnp.float32)
            for c in C_list]

    def conv_params(k, c_in):
        k1, k2 = jax.random.split(k)
        w = 0.2 * jax.random.normal(k1, (num_class, c_in, 1, 1), jnp.float32)
        b = 0.1 * jax.random.normal(k2, (num_class,), jnp.float32)
        return w, b

    cls_params = [conv_params(ks[next(ki)], c) for c in C_list]
    cls_all_params = conv_params(ks[next(ki)], C_all)

    # Pack once (numpy, offline) -- reused for every forward call.
    packed = pack_classifier_params(cls_all_params, cls_params, H, W)

    result = classifier_forward(a, data, packed)
    result = jax.block_until_ready(result)

    ref = classifier_reference(a, data, cls_all_params, cls_params)
    assert len(result) == len(ref) == len(datatype) + 1
    for got, want in zip(result, ref):
        assert got.shape == (N, num_class), got.shape
        assert jnp.allclose(got, want, rtol=1e-4, atol=1e-4), float(
            jnp.max(jnp.abs(got - want)))
    print("KERNEL_OK")
</pallas_src>

<mosaic_0001>
module attributes {stable_mosaic.version = 11 : i64} {
  func.func @kernel(%arg0: i32, %arg1: i32, %arg2: memref<2x16x256xf32, #tpu.memory_space<vmem>>, %arg3: memref<2x8x256xf32, #tpu.memory_space<vmem>>, %arg4: memref<2x4x256xf32, #tpu.memory_space<vmem>>, %arg5: memref<2x4x256xf32, #tpu.memory_space<vmem>>, %arg6: memref<32x128xf32, #tpu.memory_space<vmem>>, %arg7: memref<1x128xf32, #tpu.memory_space<vmem>>, %arg8: memref<2x128xf32, #tpu.memory_space<vmem>>, %arg9: memref<2x32xf32, #tpu.memory_space<vmem>>) attributes {dimension_semantics = [#tpu.dimension_semantics<parallel>, #tpu.dimension_semantics<arbitrary>], iteration_bounds = array<i64: 1, 1>, scalar_prefetch = 0 : i64, scratch_operands = 1 : i64, tpu.core_type = #tpu.core_type<tc>, window_params = [{transform_indices = @transform_0, window_bounds = array<i64: 2, 16, 256>}, {transform_indices = @transform_1, window_bounds = array<i64: 2, 8, 256>}, {transform_indices = @transform_2, window_bounds = array<i64: 2, 4, 256>}, {transform_indices = @transform_3, window_bounds = array<i64: 2, 4, 256>}, {pipeline_mode = #tpu.pipeline_mode<synchronous>, transform_indices = @transform_4, window_bounds = array<i64: 32, 128>}, {pipeline_mode = #tpu.pipeline_mode<synchronous>, transform_indices = @transform_5, window_bounds = array<i64: 1, 128>}, {transform_indices = @transform_6, window_bounds = array<i64: 2, 128>}]} {
    %c0_i32 = arith.constant 0 : i32
    %0 = arith.cmpi eq, %arg1, %c0_i32 : i32
    %1 = arith.extui %0 : i1 to i32
    %c0_i32_0 = arith.constant 0 : i32
    %2 = arith.cmpi ne, %1, %c0_i32_0 : i32
    scf.if %2 {
      %cst_30 = arith.constant 0.000000e+00 : f32
      %26 = vector.broadcast %cst_30 : f32 to vector<2x32xf32>
      %c0_31 = arith.constant 0 : index
      %c0_32 = arith.constant 0 : index
      %27 = vector.load %arg9[%c0_31, %c0_32] : memref<2x32xf32, #tpu.memory_space<vmem>>, vector<2x32xf32>
      tpu.vector_store %arg9[%c0_31, %c0_32], %26 {strides = array<i32>} : memref<2x32xf32, #tpu.memory_space<vmem>>, vector<2x32xf32>,
    } else {
    }
    %c0 = arith.constant 0 : index
    %c0_1 = arith.constant 0 : index
    %3 = vector.load %arg9[%c0, %c0_1] : memref<2x32xf32, #tpu.memory_space<vmem>>, vector<2x16xf32>
    %c0_2 = arith.constant 0 : index
    %c0_3 = arith.constant 0 : index
    %c0_4 = arith.constant 0 : index
    %4 = vector.load %arg2[%c0_2, %c0_3, %c0_4] : memref<2x16x256xf32, #tpu.memory_space<vmem>>, vector<2x16x256xf32>
    %cst = arith.constant dense<0.000000e+00> : vector<2x16xf32>
    %5 = vector.multi_reduction <add>, %4, %cst [2] : vector<2x16x256xf32> to vector<2x16xf32>
    %6 = arith.addf %3, %5 : vector<2x16xf32>
    %c0_5 = arith.constant 0 : index
    %c0_6 = arith.constant 0 : index
    %7 = vector.load %arg9[%c0_5, %c0_6] : memref<2x32xf32, #tpu.memory_space<vmem>>, vector<2x16xf32>
    tpu.vector_store %arg9[%c0_5, %c0_6], %6 {strides = array<i32>} : memref<2x32xf32, #tpu.memory_space<vmem>>, vector<2x16xf32>,
    %c0_7 = arith.constant 0 : index
    %c16 = arith.constant 16 : index
    %8 = vector.load %arg9[%c0_7, %c16] : memref<2x32xf32, #tpu.memory_space<vmem>>, vector<2x8xf32>
    %c0_8 = arith.constant 0 : index
    %c0_9 = arith.constant 0 : index
    %c0_10 = arith.constant 0 : index
    %9 = vector.load %arg3[%c0_8, %c0_9, %c0_10] : memref<2x8x256xf32, #tpu.memory_space<vmem>>, vector<2x8x256xf32>
    %cst_11 = arith.constant dense<0.000000e+00> : vector<2x8xf32>
    %10 = vector.multi_reduction <add>, %9, %cst_11 [2] : vector<2x8x256xf32> to vector<2x8xf32>
    %11 = arith.addf %8, %10 : vector<2x8xf32>
    %c0_12 = arith.constant 0 : index
    %c16_13 = arith.constant 16 : index
    %12 = vector.load %arg9[%c0_12, %c16_13] : memref<2x32xf32, #tpu.memory_space<vmem>>, vector<2x8xf32>
    tpu.vector_store %arg9[%c0_12, %c16_13], %11 {strides = array<i32>} : memref<2x32xf32, #tpu.memory_space<vmem>>, vector<2x8xf32>,
    %c0_14 = arith.constant 0 : index
    %c24 = arith.constant 24 : index
    %13 = vector.load %arg9[%c0_14, %c24] : memref<2x32xf32, #tpu.memory_space<vmem>>, vector<2x4xf32>
    %c0_15 = arith.constant 0 : index
    %c0_16 = arith.constant 0 : index
    %c0_17 = arith.constant 0 : index
    %14 = vector.load %arg4[%c0_15, %c0_16, %c0_17] : memref<2x4x256xf32, #tpu.memory_space<vmem>>, vector<2x4x256xf32>
    %cst_18 = arith.constant dense<0.000000e+00> : vector<2x4xf32>
    %15 = vector.multi_reduction <add>, %14, %cst_18 [2] : vector<2x4x256xf32> to vector<2x4xf32>
    %16 = arith.addf %13, %15 : vector<2x4xf32>
    %c0_19 = arith.constant 0 : index
    %c24_20 = arith.constant 24 : index
    %17 = vector.load %arg9[%c0_19, %c24_20] : memref<2x32xf32, #tpu.memory_space<vmem>>, vector<2x4xf32>
    tpu.vector_store %arg9[%c0_19, %c24_20], %16 {strides = array<i32>} : memref<2x32xf32, #tpu.memory_space<vmem>>, vector<2x4xf32>,
    %c0_21 = arith.constant 0 : index
    %c28 = arith.constant 28 : index
    %18 = vector.load %arg9[%c0_21, %c28] : memref<2x32xf32, #tpu.memory_space<vmem>>, vector<2x4xf32>
    %c0_22 = arith.constant 0 : index
    %c0_23 = arith.constant 0 : index
    %c0_24 = arith.constant 0 : index
    %19 = vector.load %arg5[%c0_22, %c0_23, %c0_24] : memref<2x4x256xf32, #tpu.memory_space<vmem>>, vector<2x4x256xf32>
    %cst_25 = arith.constant dense<0.000000e+00> : vector<2x4xf32>
    %20 = vector.multi_reduction <add>, %19, %cst_25 [2] : vector<2x4x256xf32> to vector<2x4xf32>
    %21 = arith.addf %18, %20 : vector<2x4xf32>
    %c0_26 = arith.constant 0 : index
    %c28_27 = arith.constant 28 : index
    %22 = vector.load %arg9[%c0_26, %c28_27] : memref<2x32xf32, #tpu.memory_space<vmem>>, vector<2x4xf32>
    tpu.vector_store %arg9[%c0_26, %c28_27], %21 {strides = array<i32>} : memref<2x32xf32, #tpu.memory_space<vmem>>, vector<2x4xf32>,
    %c0_i32_28 = arith.constant 0 : i32
    %23 = arith.cmpi eq, %arg1, %c0_i32_28 : i32
    %24 = arith.extui %23 : i1 to i32
    %c0_i32_29 = arith.constant 0 : i32
    %25 = arith.cmpi ne, %24, %c0_i32_29 : i32
    scf.if %25 {
      %c0_30 = arith.constant 0 : index
      %c0_31 = arith.constant 0 : index
      %26 = vector.load %arg9[%c0_30, %c0_31] : memref<2x32xf32, #tpu.memory_space<vmem>>, vector<2x32xf32>
      %c0_32 = arith.constant 0 : index
      %c0_33 = arith.constant 0 : index
      %27 = vector.load %arg6[%c0_32, %c0_33] : memref<32x128xf32, #tpu.memory_space<vmem>>, vector<32x128xf32>
      %cst_34 = arith.constant dense<0.000000e+00> : vector<2x128xf32>
      %28 = tpu.matmul %26, %27, %cst_34 {dimension_numbers = #tpu.dot_dimension_numbers<[1], [0], [0], [1], [0, 0, 1, 1], [], []>} : vector<2x32xf32>, vector<32x128xf32>, vector<2x128xf32> -> vector<2x128xf32>
      %c0_35 = arith.constant 0 : index
      %c0_36 = arith.constant 0 : index
      %29 = vector.load %arg7[%c0_35, %c0_36] : memref<1x128xf32, #tpu.memory_space<vmem>>, vector<1x128xf32>
      %30 = vector.broadcast %29 : vector<1x128xf32> to vector<2x128xf32>
      %31 = arith.addf %28, %30 : vector<2x128xf32>
      %c0_37 = arith.constant 0 : index
      %c0_38 = arith.constant 0 : index
      %32 = vector.load %arg8[%c0_37, %c0_38] : memref<2x128xf32, #tpu.memory_space<vmem>>, vector<2x128xf32>
      tpu.vector_store %arg8[%c0_37, %c0_38], %31 {strides = array<i32>} : memref<2x128xf32, #tpu.memory_space<vmem>>, vector<2x128xf32>,
    } else {
    }
    return
  }
  func.func @transform_0(%arg0: i32, %arg1: i32) -> (i32, i32, i32) {
    %c0_i32 = arith.constant 0 : i32
    %c0_i32_0 = arith.constant 0 : i32
    return %arg0, %c0_i32, %arg1 : i32, i32, i32
  }
  func.func @transform_1(%arg0: i32, %arg1: i32) -> (i32, i32, i32) {
    %c0_i32 = arith.constant 0 : i32
    %c0_i32_0 = arith.constant 0 : i32
    return %arg0, %c0_i32, %arg1 : i32, i32, i32
  }
  func.func @transform_2(%arg0: i32, %arg1: i32) -> (i32, i32, i32) {
    %c0_i32 = arith.constant 0 : i32
    %c0_i32_0 = arith.constant 0 : i32
    return %arg0, %c0_i32, %arg1 : i32, i32, i32
  }
  func.func @transform_3(%arg0: i32, %arg1: i32) -> (i32, i32, i32) {
    %c0_i32 = arith.constant 0 : i32
    %c0_i32_0 = arith.constant 0 : i32
    return %arg0, %c0_i32, %arg1 : i32, i32, i32
  }
  func.func @transform_4(%arg0: i32, %arg1: i32) -> (i32, i32) {
    %c0_i32 = arith.constant 0 : i32
    %c0_i32_0 = arith.constant 0 : i32
    %c0_i32_1 = arith.constant 0 : i32
    return %c0_i32, %c0_i32_0 : i32, i32
  }
  func.func @transform_5(%arg0: i32, %arg1: i32) -> (i32, i32) {
    %c0_i32 = arith.constant 0 : i32
    %c0_i32_0 = arith.constant 0 : i32
    %c0_i32_1 = arith.constant 0 : i32
    return %c0_i32, %c0_i32_0 : i32, i32
  }
  func.func @transform_6(%arg0: i32, %arg1: i32) -> (i32, i32) {
    %c0_i32 = arith.constant 0 : i32
    %c0_i32_0 = arith.constant 0 : i32
    return %arg0, %c0_i32 : i32, i32
  }
}

</mosaic_0001>

<bundles_post_ra>
// kernel: tpu_custom_call.1
= control target key start
LH: loop header
LB: loop body
LE: loop exit
PB: predicated region body
PF: predicated region fallthrough
CT: control target
= control target key end

     0   :  { %11 = vsyncpa [#allocation4], 0  ;;  %s687_s0 = inlined_call_operand.hbm [shape: f32[2,16,256], index: 0, kind: input, shape index: {}]   ;;  %s688_s1 = inlined_call_operand.hbm [shape: f32[2,8,256], index: 1, kind: input, shape index: {}]   ;;  %s689_s2 = inlined_call_operand.hbm [shape: f32[2,4,256], index: 2, kind: input, shape index: {}]   ;;  %s690_s3 = inlined_call_operand.hbm [shape: f32[2,4,256], index: 3, kind: input, shape index: {}]   ;;  %s691_s4 = inlined_call_operand.hbm [shape: f32[32,128], index: 4, kind: input, shape index: {}]   ;;  %s692_s5 = inlined_call_operand.vmem [shape: f32[1,128], index: 5, kind: input, shape index: {}]   ;;  %s693_s6 = inlined_call_operand.hbm [shape: f32[2,128], index: 6, kind: output, shape index: {}]  }
   0x1   :  { %12 = vsyncpa [#allocation7], 0 }
   0x2   :  { %13 = vsyncpa [#allocation10], 0 }
   0x3   :  { %14 = vsyncpa [#allocation5], 0  ;;  %s537_s21 = smov [#allocation6]   ;;  %s397_s25 = scalar_lea.hbm %s688_s1, 512 }
   0x4   :  { %s32_s22 = sshll.u32 %s537_s21, 4  ;;  %p398_p0 = scmp.ne.s32.totalorder %s688_s1, %s397_s25  ;;  %s33_s22 = int_to_ptr.vmem [resolvable:$true] %s32_s22 }
   0x5   :  { %p401_p1 = scmp.lt.u32.totalorder %s397_s25, %s688_s1 }
   0x7   :  { %p403_p2 = pnand %p401_p1, %p398_p0 }
   0x9   :  { %406 = shalt.err (!%p403_p2)
}
   0xa   :  { %s407_s30 = scalar_lea.vmem %s33_s22, 512  ;;  %p412_p4 = scmp.lt.s32.totalorder %s33_s22, %s33_s22 }
   0xb   :  { %p408_p3 = scmp.ne.s32.totalorder %s33_s22, %s407_s30  ;;  %p413_p5 = scmp.lt.s32.totalorder %s407_s30, %s407_s30 }
   0xd   :  { %p414_p6 = por %p413_p5, %p412_p4 }
   0xf   :  { %p415_p7 = pnand %p414_p6, %p408_p3 }
  0x11   :  { %418 = shalt.err (!%p415_p7)
}
  0x12   :  { %s538_s7 = smov 256   ;;  %s539_s8 = smov 16  }
  0x13   :  { %38 = dma.hbm_to_vmem [thread:$0]  %s688_s1, 512, %s33_s22, [#allocation7], %s538_s7, %s538_s7, %s539_s8  }
  0x14   :  { %s540_s11 = smov [#allocation9]   ;;  %s541_s13 = smov [#allocation3]  }
  0x15   :  { %s56_s12 = sshll.u32 %s540_s11, 4  ;;  %s20_s14 = sshll.u32 %s541_s13, 4  ;;  %s57_s12 = int_to_ptr.vmem [resolvable:$true] %s56_s12  ;;  %s21_s14 = int_to_ptr.vmem [resolvable:$true] %s20_s14 }
  0x16   :  { %s419_s17 = scalar_lea.hbm %s690_s3, 256 }
  0x17   :  { %p420_p8 = scmp.ne.s32.totalorder %s690_s3, %s419_s17  ;;  %p423_p9 = scmp.lt.u32.totalorder %s419_s17, %s690_s3 }
  0x19   :  { %p425_p10 = pnand %p423_p9, %p420_p8 }
  0x1b   :  { %428 = shalt.err (!%p425_p10)
}
  0x1c   :  { %s429_s1 = scalar_lea.vmem %s57_s12, 256  ;;  %p434_p12 = scmp.lt.s32.totalorder %s57_s12, %s57_s12 }
  0x1d   :  { %p430_p11 = scmp.ne.s32.totalorder %s57_s12, %s429_s1  ;;  %p435_p13 = scmp.lt.s32.totalorder %s429_s1, %s429_s1 }
  0x1f   :  { %p436_p0 = por %p435_p13, %p434_p12 }
  0x21   :  { %p437_p1 = pnand %p436_p0, %p430_p11 }
  0x23   :  { %440 = shalt.err (!%p437_p1)
}
  0x24   :  { %s542_s22 = smov 128   ;;  %s543_s23 = smov 8  }
  0x25   :  { %62 = dma.hbm_to_vmem [thread:$0]  %s690_s3, 256, %s57_s12, [#allocation10], %s542_s22, %s542_s22, %s543_s23  }
  0x26   :  { %s441_s28 = scalar_lea.hbm %s687_s0, 1024 }
  0x27   :  { %p442_p2 = scmp.ne.s32.totalorder %s687_s0, %s441_s28  ;;  %p445_p3 = scmp.lt.u32.totalorder %s441_s28, %s687_s0 }
  0x29   :  { %p447_p4 = pnand %p445_p3, %p442_p2 }
  0x2b   :  { %450 = shalt.err (!%p447_p4)
}
  0x2c   :  { %s451_s11 = scalar_lea.vmem %s21_s14, 1024  ;;  %p456_p6 = scmp.lt.s32.totalorder %s21_s14, %s21_s14 }
  0x2d   :  { %p452_p5 = scmp.ne.s32.totalorder %s21_s14, %s451_s11  ;;  %p457_p7 = scmp.lt.s32.totalorder %s451_s11, %s451_s11 }
  0x2f   :  { %p458_p8 = por %p457_p7, %p456_p6 }
  0x31   :  { %p459_p9 = pnand %p458_p8, %p452_p5 }
  0x33   :  { %462 = shalt.err (!%p459_p9)
}
  0x34   :  { %26 = dma.hbm_to_vmem [thread:$0]  %s687_s0, 1024, %s21_s14, [#allocation4], %s538_s7, %s538_s7, %s539_s8  }
  0x35   :  { %s544_s13 = smov [#allocation8]   ;;  %s545_s16 = smov [#allocation11]  }
  0x36   :  { %s44_s15 = sshll.u32 %s544_s13, 4  ;;  %s68_s17 = sshll.u32 %s545_s16, 4  ;;  %s45_s15 = int_to_ptr.vmem [resolvable:$true] %s44_s15  ;;  %s69_s17 = int_to_ptr.vmem [resolvable:$true] %s68_s17 }
  0x37   :  { %s463_s20 = scalar_lea.hbm %s689_s2, 256 }
  0x38   :  { %p464_p10 = scmp.ne.s32.totalorder %s689_s2, %s463_s20  ;;  %p467_p11 = scmp.lt.u32.totalorder %s463_s20, %s689_s2 }
  0x3a   :  { %p469_p12 = pnand %p467_p11, %p464_p10 }
  0x3c   :  { %472 = shalt.err (!%p469_p12)
}
  0x3d   :  { %s473_s0 = scalar_lea.vmem %s45_s15, 256  ;;  %p478_p0 = scmp.lt.s32.totalorder %s45_s15, %s45_s15 }
  0x3e   :  { %p474_p13 = scmp.ne.s32.totalorder %s45_s15, %s473_s0  ;;  %p479_p1 = scmp.lt.s32.totalorder %s473_s0, %s473_s0 }
  0x40   :  { %p480_p2 = por %p479_p1, %p478_p0 }
  0x42   :  { %p481_p3 = pnand %p480_p2, %p474_p13 }
  0x44   :  { %484 = shalt.err (!%p481_p3)
}
  0x45   :  { %50 = dma.hbm_to_vmem [thread:$0]  %s689_s2, 256, %s45_s15, [#allocation7], %s542_s22, %s542_s22, %s543_s23  }
  0x46   :  { %s485_s27 = scalar_lea.hbm %s691_s4, 512 }
  0x47   :  { %p486_p4 = scmp.ne.s32.totalorder %s691_s4, %s485_s27  ;;  %p489_p5 = scmp.lt.u32.totalorder %s485_s27, %s691_s4 }
  0x49   :  { %p491_p6 = pnand %p489_p5, %p486_p4 }
  0x4b   :  { %494 = shalt.err (!%p491_p6)
}
  0x4c   :  { %s495_s10 = scalar_lea.vmem %s69_s17, 512  ;;  %p500_p8 = scmp.lt.s32.totalorder %s69_s17, %s69_s17 }
  0x4d   :  { %p496_p7 = scmp.ne.s32.totalorder %s69_s17, %s495_s10  ;;  %p501_p9 = scmp.lt.s32.totalorder %s495_s10, %s495_s10 }
  0x4f   :  { %p502_p10 = por %p501_p9, %p500_p8 }
  0x51   :  { %p503_p11 = pnand %p502_p10, %p496_p7 }
  0x53   :  { %506 = shalt.err (!%p503_p11)
}
  0x54   :  { %74 = dma.hbm_to_vmem [thread:$0]  %s691_s4, 512, %s69_s17, [#allocation10], %s542_s22, %s542_s22, %s543_s23  }
  0x55   :  { %529 = dma.done.wait [#allocation4], 1024  }
  0x56   :  { %530 = vsyncadd [#allocation4], 4294966272 }
  0x57   :  { %531 = dma.done.wait [#allocation7], 768  }
  0x58   :  { %532 = vsyncadd [#allocation7], 4294966528 }
  0x59   :  { %533 = dma.done.wait [#allocation10], 768  }
  0x5a   :  { %534 = vsyncadd [#allocation10], 4294966528  ;;  %v103_v0 = vld [vmem:[#allocation3 + $0x20] sm:$0xff]  ;;  %v104_v1 = vld [vmem:[#allocation3 + $0x28] sm:$0xff]  ;;  %vm187_vm0 = vcmask 1043456   ;;  %vm96_vm1 = vcmask 254976   ;;  %v123_v46 = vlaneseq }
  0x5b   :  { %v99_v2 = vld [vmem:[#allocation3] sm:$0xff]  ;;  %v113_v3 = vadd.f32 %v104_v1, %v103_v0  ;;  %v100_v4 = vld [vmem:[#allocation3 + $0x8] sm:$0xff]  ;;  %v105_v5 = vld [vmem:[#allocation3 + $0x30] sm:$0xff]  ;;  %v546_v38 = vmov 0.0   ;;  %v547_v42 = vmov 0.0|0.0   ;;  %vm548_vm2 = vmmov 0  }
  0x5c   :  { %v106_v6 = vld [vmem:[#allocation3 + $0x38] sm:$0xff]  ;;  %v107_v7 = vadd.f32 %v100_v4, %v99_v2  ;;  %v101_v8 = vld [vmem:[#allocation3 + $0x10] sm:$0xff]  ;;  %v180_v14 = vld [vmem:[#allocation8 + $0x8] sm:$0xff]  ;;  %97 = vst.msk [vmem:[#allocation2] sm:$0x3] %vm96_vm1, %v546_v38  ;;  %374 = vmatprep.subr.bf16.mxu0 %v547_v42  ;;  %371 = vmatprep.mubr.msk.f32.mxu0 %vm548_vm2, %v546_v38  ;;  %v124_v47 = vand.u32 127, %v123_v46 }
  0x5d   :  { %v102_v9 = vld [vmem:[#allocation3 + $0x18] sm:$0xff]  ;;  %114 = vadd.xlane.f32.xlu1 %v113_v3  ;;  %v116_v10 = vadd.f32 %v106_v6, %v105_v5  ;;  %v154_v11 = vld [vmem:[#allocation6 + $0x10] sm:$0xff]  ;;  %v179_v15 = vld [vmem:[#allocation8] sm:$0xff]  ;;  %v184_v18 = vcombine.high %v180_v14, %v180_v14  ;;  %v193_v24 = vsel %vm187_vm0, %v180_v14, 0.0  ;;  %v126_v48 = vshrl.u32 %v123_v46, 7  ;;  %s549_s23 = smov [#allocation12]  }
  0x5e   :  { %108 = vadd.xlane.f32.xlu0 %v107_v7  ;;  %v110_v12 = vadd.f32 %v102_v9, %v101_v8  ;;  %v155_v13 = vld [vmem:[#allocation6 + $0x18] sm:$0xff]  ;;  %v152_v16 = vld [vmem:[#allocation6] sm:$0xff]  ;;  %v153_v17 = vld [vmem:[#allocation6 + $0x8] sm:$0xff]  ;;  %v183_v19 = vcombine.high %v179_v15, %v179_v15  ;;  %v188_v27 = vsel %vm187_vm0, %v179_v15, 0.0  ;;  %v129_v49 = vadd.s32 4294967288, %v124_v47  ;;  %s345_s3 = sshll.u32 %s549_s23, 4  ;;  %s346_s3 = int_to_ptr.vmem [resolvable:$true] %s345_s3 }
  0x5f   :  { %v216_v20 = vld [vmem:[#allocation9 + $0x8] sm:$0xff]  ;;  %v215_v21 = vld [vmem:[#allocation9] sm:$0xff]  ;;  %v159_v22 = vadd.f32 %v155_v13, %v154_v11  ;;  %v156_v23 = vadd.f32 %v153_v17, %v152_v16  ;;  %v194_v25 = vsel %vm187_vm0, %v184_v18, 0.0  ;;  %v253_v39 = vld [vmem:[#allocation11] sm:$0xff]  ;;  %v127_v51 = vsub.s32 %v124_v47, %v126_v48  ;;  %s507_s12 = scalar_lea.vmem %s346_s3, 32  ;;  %p512_p13 = scmp.lt.s32.totalorder %s346_s3, %s346_s3 }
  0x60   :  { %v220_v26 = vcombine.high %v216_v20, %v216_v20  ;;  %v189_v28 = vsel %vm187_vm0, %v183_v19, 0.0  ;;  %v219_v29 = vcombine.high %v215_v21, %v215_v21  ;;  %v195_v30 = vadd.f32 %v194_v25, %v193_v24  ;;  %v254_v40 = vld [vmem:[#allocation11 + $0x8] sm:$0xff]  ;;  %v255_v41 = vld [vmem:[#allocation11 + $0x10] sm:$0xff]  ;;  %v256_v44 = vld [vmem:[#allocation11 + $0x18] sm:$0xff]  ;;  %p508_p12 = scmp.ne.s32.totalorder %s346_s3, %s507_s12  ;;  %p513_p0 = scmp.lt.s32.totalorder %s507_s12, %s507_s12 }
  0x61   :  { %117 = vadd.xlane.f32.xlu1 %v116_v10  ;;  %v190_v31 = vadd.f32 %v189_v28, %v188_v27  ;;  %v228_v32 = vsel %vm187_vm0, %v216_v20, 0.0  ;;  %v223_v34 = vsel %vm187_vm0, %v215_v21, 0.0  ;;  %v375_v43 = vpack.c.bf16 %v254_v40, %v253_v39 }
  0x62   :  { %111 = vadd.xlane.f32.xlu0 %v110_v12  ;;  %v229_v33 = vsel %vm187_vm0, %v220_v26, 0.0  ;;  %v224_v35 = vsel %vm187_vm0, %v219_v29, 0.0  ;;  %v378_v45 = vpack.c.bf16 %v256_v44, %v255_v41  ;;  %v132_v53 = vsub.s32 %v129_v49, %v126_v48  ;;  %v356_v29 = vld [vmem:[%s692_s5] ss:$0 sm:$0xff]  ;;  %p514_p1 = por %p513_p0, %p512_p13 }
  0x63   :  { %v230_v36 = vadd.f32 %v229_v33, %v228_v32  ;;  %v225_v37 = vadd.f32 %v224_v35, %v223_v34  ;;  %376 = vmatpush3.bf16.msra.mxu0 %v375_v43  ;;  %vm134_vm3 = vcmask 130112   ;;  %v164_v58 = vadd.s32 4294967280, %v124_v47  ;;  %v98_v62 = vld [vmem:[#allocation2] sm:$0x3] }
  0x64   :  { %377 = vmatprep.subr.bf16.mxu0 %v547_v42  ;;  %vm145_vm4 = vcmask 1041409   ;;  %vm149_vm5 = vcmask 123904   ;;  %v200_v7 = vadd.s32 4294967272, %v124_v47  ;;  %vm176_vm6 = vcmask 189568   ;;  %p515_p2 = pnand %p514_p1, %p508_p12 }
  0x65   :  { %160 = vadd.xlane.f32.xlu1 %v159_v22  ;;  %v167_v1 = vsub.s32 %v164_v58, %v126_v48  ;;  %v235_v16 = vadd.s32 4294967268, %v124_v47  ;;  %vm212_vm7 = vcmask 222400   ;;  %vm247_vm8 = vcmask 255200  }
  0x66   :  { %157 = vadd.xlane.f32.xlu0 %v156_v23  ;;  %v203_v9 = vsub.s32 %v200_v7, %v126_v48  ;;  %vm264_vm9 = vcmask 261120  }
  0x67   :  { %379 = vmatpush3.bf16.msra.mxu0 %v378_v45  ;;  %v238_v18 = vsub.s32 %v235_v16, %v126_v48 }
  0x69   :  { %196 = vadd.xlane.f32.xlu1 %v195_v30 }
  0x6a   :  { %191 = vadd.xlane.f32.xlu0 %v190_v31 }
  0x6d   :  { %231 = vadd.xlane.f32.xlu1 %v230_v36 }
  0x6e   :  { %226 = vadd.xlane.f32.xlu0 %v225_v37 }
  0xea   :  { %v115_v50 = vpop.xlane.xlu1 %114 }
  0xeb   :  { %v109_v52 = vpop.xlane.xlu0 %108  ;;  %v139_v55 = vrot.slane %v115_v50, %v127_v51 }
  0xec   :  { %v128_v59 = vrot.slane %v109_v52, %v127_v51 }
  0xee   :  { %v118_v54 = vpop.xlane.xlu1 %117 }
  0xef   :  { %v143_v56 = vrot.slane %v118_v54, %v132_v53  ;;  %v112_v57 = vpop.xlane.xlu0 %111 }
  0xf0   :  { %v133_v60 = vrot.slane %v112_v57, %v132_v53 }
  0xf1   :  { %v144_v61 = vsel %vm134_vm3, %v143_v56, %v139_v55 }
  0xf2   :  { %v135_v63 = vsel %vm134_vm3, %v133_v60, %v128_v59  ;;  %v161_v2 = vpop.xlane.xlu1 %160 }
  0xf3   :  { %v146_v0 = vsel %vm145_vm4, %v144_v61, %v135_v63  ;;  %v158_v3 = vpop.xlane.xlu0 %157  ;;  %v172_v5 = vrot.slane %v161_v2, %v167_v1 }
  0xf4   :  { %v148_v4 = vadd.f32 %v146_v0, %v98_v62  ;;  %v168_v6 = vrot.slane %v158_v3, %v167_v1 }
  0xf6   :  { %150 = vst.msk [vmem:[#allocation2] sm:$0x3] %vm149_vm5, %v148_v4  ;;  %v173_v8 = vsel %vm145_vm4, %v172_v5, %v168_v6  ;;  %v197_v11 = vpop.xlane.xlu1 %196 }
  0xf7   :  { %v192_v12 = vpop.xlane.xlu0 %191  ;;  %v208_v14 = vrot.slane %v197_v11, %v203_v9 }
  0xf8   :  { %v204_v15 = vrot.slane %v192_v12, %v203_v9 }
  0xfa   :  { %v209_v17 = vsel %vm145_vm4, %v208_v14, %v204_v15  ;;  %v232_v20 = vpop.xlane.xlu1 %231 }
  0xfb   :  { %v227_v21 = vpop.xlane.xlu0 %226  ;;  %v243_v23 = vrot.slane %v232_v20, %v238_v18 }
  0xfc   :  { %v239_v24 = vrot.slane %v227_v21, %v238_v18 }
  0xfd   :  { %v151_v10 = vld [vmem:[#allocation2] sm:$0x3] }
  0xfe   :  { %v175_v13 = vadd.f32 %v173_v8, %v151_v10  ;;  %v244_v25 = vsel %vm145_vm4, %v243_v23, %v239_v24 }
 0x100   :  { %177 = vst.msk [vmem:[#allocation2] sm:$0x3] %vm176_vm6, %v175_v13 }
 0x107   :  { %v178_v19 = vld [vmem:[#allocation2] sm:$0x3] }
 0x108   :  { %v211_v22 = vadd.f32 %v209_v17, %v178_v19 }
 0x10a   :  { %213 = vst.msk [vmem:[#allocation2] sm:$0x3] %vm212_vm7, %v211_v22 }
 0x111   :  { %v214_v26 = vld [vmem:[#allocation2] sm:$0x3] }
 0x112   :  { %v246_v27 = vadd.f32 %v244_v25, %v214_v26 }
 0x114   :  { %248 = vst.msk [vmem:[#allocation2] sm:$0x3] %vm247_vm8, %v246_v27 }
 0x11b   :  { %v252_v28 = vld [vmem:[#allocation2] sm:$0x3] }
 0x11c   :  { %372 = vmatmul.mubr.msk.f32.vlgmr.msra.gmra.mrb[0].mxu0 %vm264_vm9, %v252_v28 }
 0x1ef   :  { %v334_v30 = vpop.f32.mrb[0].mxu0 }
 0x1f0   :  { %v335_v31 = vadd.f32 %v356_v29, %v334_v30  ;;  %v373_v32 = vpop.f32.mrb[1].mxu0 }
 0x1f2   :  { %338 = vst [vmem:[#allocation12] sm:$0x3] %v335_v31 }
 0x1f3   :  { %518 = shalt.err (!%p515_p2)
}
 0x1f4   :  { %s519_s16 = scalar_lea.hbm %s693_s6, 32 }
 0x1f5   :  { %p520_p3 = scmp.ne.s32.totalorder %s693_s6, %s519_s16  ;;  %p523_p4 = scmp.lt.u32.totalorder %s519_s16, %s693_s6 }
 0x1f7   :  { %p525_p5 = pnand %p523_p4, %p520_p3 }
 0x1f9   :  { %528 = shalt.err (!%p525_p5)
}
 0x1fa   :  { %348 = dma.vmem_to_hbm [thread:$0]  %s346_s3, 32, %s693_s6, [#allocation5]  }
 0x1fb   :  { %535 = dma.done.wait [#allocation5], 32  }
 0x1fc   :  { %536 = vsyncadd [#allocation5], 4294967264 }
 0x1fd   :  { %352 = vsyncpa [#allocation4], 1 }
 0x1fe   :  { %353 = vsyncpa [#allocation7], 1 }
 0x1ff   :  { %354 = vsyncpa [#allocation10], 1 }
 0x200   :  { %355 = vsyncpa [#allocation5], 1 }

</bundles_post_ra>
